<compile_context>
chip_gen: v7x
topology: tpu7x:2x2x1
jax: 0.10.0
libtpu: 0.0.40
codegen_flags: <defaults>
</compile_context>

<pallas_src>
import functools

import jax
import jax.numpy as jnp
from jax.experimental import pallas as pl
from jax.experimental.pallas import tpu as pltpu


_SMALL_K_THRESHOLD = 8   # layers with f_in <= this skip the MXU (VPU FMAs)
_MAX_BLOCK_COLS = 1024   # lane-tile cap; above this the (32, B) f32 temps
                         # start to pressure the 64-entry vreg file


def _round_up(x, m):
    return ((x + m - 1) // m) * m


def _tree_sum(terms):
    """Balanced-tree sum (keeps the 4 VALU slots fed vs. a serial chain)."""
    terms = list(terms)
    while len(terms) > 1:
        nxt = [a + b for a, b in zip(terms[0::2], terms[1::2])]
        if len(terms) % 2:
            nxt.append(terms[-1])
        terms = nxt
    return terms[0]


def _tpu_flavor():
    """Best-effort chip introspection: (tensorcores_per_chip, bf16 VPU/EUP?)."""
    try:
        kind = jax.devices()[0].device_kind.lower()
    except Exception:
        return 1, False
    two_tc = any(t in kind for t in ("v7", "v4", "v5p"))
    bf16_vpu = ("v6" in kind) or ("v7" in kind)
    return (2 if two_tc else 1), bf16_vpu


def _mlp_kernel(*refs, kinds, bf16_act):
    """Fused MLP forward in (features, batch) layout.

    refs = (x_ref, W0, b0, W1, b1, ..., W_{L-1}, b_{L-1}, out_ref)

    x_ref:   (f_in0, B)     input tile, batch on lanes
    W_i:     (f_out, f_in)  except kind == "reduce" layers, which get (f_in, 1)
    b_i:     (f_out, 1)
    out_ref: (f_out_last, B)

    kinds[i] in {"fma", "mxu", "reduce"} selects the per-layer compute path.
    Hidden layers use tanh; the final layer is purely linear (matches DNN).
    """
    x_ref = refs[0]
    out_ref = refs[-1]
    params = refs[1:-1]
    n_layers = len(params) // 2

    h = x_ref[...].astype(jnp.float32)                       # (f_in0, B)

    for layer in range(n_layers):
        w_ref = params[2 * layer]
        b = params[2 * layer + 1][...].astype(jnp.float32)   # (f_out, 1)
        kind = kinds[layer]
        is_hidden = layer < n_layers - 1

        if kind == "fma":
            # Tiny contraction dim (the 2-wide PINN input): an MXU pass would
            # use <2% of the array but pay full push/drain latency, so do it
            # as broadcast FMAs on otherwise-idle VPU slots (balanced tree).
            w = w_ref[...].astype(jnp.float32)               # (f_out, f_in)
            hf = h.astype(jnp.float32)
            terms = [w[:, k:k + 1] * hf[k:k + 1, :] for k in range(w.shape[1])]
            z = _tree_sum(terms) + b                         # (f_out, B)
        elif kind == "reduce":
            # Final width-1 layer: elementwise multiply + sublane (XLU) reduce
            # instead of an N=1 MXU pass.  Kept in f32.
            wt = w_ref[...].astype(jnp.float32)              # (f_in, 1)
            z = jnp.sum(wt * h.astype(jnp.float32), axis=0, keepdims=True) + b
        else:  # "mxu"
            w = w_ref[...]                                   # (f_out, f_in)
            h_op = h if h.dtype == w.dtype else h.astype(w.dtype)
            z = jnp.dot(w, h_op, preferred_element_type=jnp.float32) + b

        if is_hidden:
            if bf16_act and kind == "mxu":
                # bf16 bias+tanh halves the vregs and VPU/EUP pushes on
                # bf16-capable chips, and leaves h already packed as the
                # next layer's MXU operand (no per-layer f32->bf16 repack).
                h = jnp.tanh(z.astype(jnp.bfloat16))
            else:
                h = jnp.tanh(z)
        else:
            h = z

    out_ref[...] = h.astype(out_ref.dtype)


def prepare_params(weights, biases, *, use_bf16_matmul=True):
    """Per-layer layout / dtype prep (cheap; do once and reuse across calls).

    weights: list of (f_out, f_in) arrays (torch.nn.Linear .weight layout).
    biases:  list of (f_out,) arrays.
    Returns (kinds, flat_param_list) ready to feed to the kernel.
    """
    n_layers = len(weights)
    kinds, flat = [], []
    for li, (w, b) in enumerate(zip(weights, biases)):
        w = jnp.asarray(w, jnp.float32)
        b = jnp.asarray(b, jnp.float32)
        f_out, f_in = w.shape
        if li == n_layers - 1 and f_out == 1:
            kinds.append("reduce")
            w_k = w.T                                        # (f_in, 1), f32
        elif f_in <= _SMALL_K_THRESHOLD:
            kinds.append("fma")
            w_k = w                                          # f32
        else:
            kinds.append("mxu")
            w_k = w.astype(jnp.bfloat16) if use_bf16_matmul else w
        flat.extend([w_k, b.reshape(f_out, 1)])
    return tuple(kinds), flat


def _pick_block_cols(n, num_tc):
    """Generation-aware lane-tile size."""
    one_tile = _round_up(max(n, 1), 128)
    if num_tc <= 1 or n <= 256:
        # Single TensorCore (v5e/v6e) or tiny batch: one tile when it fits --
        # no per-step overhead, no pointless pipeline stages.
        return min(_MAX_BLOCK_COLS, one_tile)
    # 2 TensorCores (v7x/v4/v5p): keep the grid length even so "parallel"
    # megacore sharding is balanced (odd grids leave one core idle at the end).
    if one_tile <= _MAX_BLOCK_COLS:
        return max(128, _round_up(pl.cdiv(n, 2), 128))
    bc = _MAX_BLOCK_COLS
    g = pl.cdiv(n, bc)
    if g % 2:
        g += 1
        bc = max(128, _round_up(pl.cdiv(n, g), 128))
    return bc


def dnn_forward(x, weights, biases, *, x_layout="nf", out_layout="nf",
                block_cols=None, use_bf16_matmul=True, bf16_activations=None):
    """Run the fused MLP kernel.

    x_layout="nf": x is (N, f_in) as in the PyTorch module (one tiny wrapper
      transpose).  For repeated / large-N calls keep activations in (f_in, N)
      and pass x_layout="fb" -- then nothing is relayouted outside the kernel.
    out_layout="nf": returns (N, f_out) (PyTorch convention); "fb" returns the
      kernel-native (f_out, N) with no extra launch.
    use_bf16_matmul: bf16 MXU operands (f32 accumulate) for square hidden
      layers (default ON -- native MXU operand type on v5e/v6e/v7x).
    bf16_activations: run hidden bias+tanh in bf16 (None = auto: v6e/v7x).
    """
    num_tc, bf16_vpu = _tpu_flavor()
    if bf16_activations is None:
        bf16_activations = bf16_vpu
    bf16_activations = bool(bf16_activations and use_bf16_matmul)

    if x_layout == "fb":
        x_fb = x
    else:
        # TODO(synk): callers that can keep data in (features, N) layout should
        # pass x_layout="fb" and skip this wrapper-side HBM round-trip.
        x_fb = x.T
    f_in0, n = x_fb.shape
    f_out_last = int(weights[-1].shape[0])

    kinds, flat_params = prepare_params(weights, biases,
                                        use_bf16_matmul=use_bf16_matmul)

    if block_cols is None:
        block_cols = int(_pick_block_cols(n, num_tc))
    assert block_cols % 128 == 0, "block_cols must be a multiple of 128 (lanes)"
    grid = (pl.cdiv(n, block_cols),)

    # Weights/biases: whole arrays resident in VMEM for the entire call --
    # no per-step DMA and no unused double buffers.
    param_specs = [pl.BlockSpec(memory_space=pltpu.MemorySpace.VMEM)
                   for _ in flat_params]

    # Advisory cost estimate so XLA schedules this tiny call sensibly.
    flops = 2 * n * sum(int(w.shape[0]) * int(w.shape[1]) for w in weights)
    transcendentals = n * sum(int(w.shape[0]) for w in weights[:-1])  # tanh
    param_bytes = sum(int(p.size) * p.dtype.itemsize for p in flat_params)
    bytes_accessed = n * (f_in0 + f_out_last) * 4 + param_bytes

    kernel = functools.partial(_mlp_kernel, kinds=kinds,
                               bf16_act=bf16_activations)

    out_fb = pl.pallas_call(
        kernel,
        out_shape=jax.ShapeDtypeStruct((f_out_last, n), x_fb.dtype),
        grid=grid,
        in_specs=[pl.BlockSpec((f_in0, block_cols), lambda i: (0, i))]
                 + param_specs,
        out_specs=pl.BlockSpec((f_out_last, block_cols), lambda i: (0, i)),
        compiler_params=pltpu.CompilerParams(
            dimension_semantics=("parallel",)),
        cost_estimate=pl.CostEstimate(
            flops=int(flops),
            transcendentals=int(transcendentals),
            bytes_accessed=int(bytes_accessed)),
    )(x_fb, *flat_params)

    if out_layout == "fb":
        return out_fb
    return out_fb.T


def init_dnn_params(key, layers):
    """Mimics torch.nn.Linear default init: U(-k, k), k = 1/sqrt(fan_in)."""
    weights, biases = [], []
    for i in range(len(layers) - 1):
        f_in, f_out = layers[i], layers[i + 1]
        key, kw, kb = jax.random.split(key, 3)
        bound = 1.0 / float(f_in) ** 0.5
        weights.append(jax.random.uniform(kw, (f_out, f_in), jnp.float32,
                                          -bound, bound))
        biases.append(jax.random.uniform(kb, (f_out,), jnp.float32,
                                         -bound, bound))
    return weights, biases


def _reference_forward(x, weights, biases):
    h = x
    for i, (w, b) in enumerate(zip(weights, biases)):
        h = h @ w.T + b
        if i < len(weights) - 1:
            h = jnp.tanh(h)
    return h


if __name__ == "__main__":
    # Typical PINN (Burgers) architecture: 2 inputs (x, t) -> 1 output (u).
    layers = [2, 32, 32, 32, 1]

    key = jax.random.PRNGKey(0)
    key, kx = jax.random.split(key)

    # Deliberately NOT a multiple of 128: exercises the boundary-masked tile
    # (no wrapper-side padding anywhere).
    n = 300
    x = jax.random.normal(kx, (n, layers[0]), jnp.float32)

    weights, biases = init_dnn_params(key, layers)
    ref = _reference_forward(x, weights, biases)

    # Full-f32 path: tight structural / boundary-masking check.
    out_f32 = jax.block_until_ready(
        dnn_forward(x, weights, biases,
                    use_bf16_matmul=False, bf16_activations=False))
    assert out_f32.shape == (n, layers[-1])
    assert jnp.allclose(out_f32, ref, atol=1e-5, rtol=1e-5), "f32 mismatch"

    # Multi-step grid (forces grid=(3,)): exercises pipelined lane tiles.
    out_multi = jax.block_until_ready(
        dnn_forward(x, weights, biases, block_cols=128,
                    use_bf16_matmul=False, bf16_activations=False))
    assert jnp.allclose(out_multi, ref, atol=1e-5, rtol=1e-5), "grid>1 mismatch"

    # FB-layout fast path: zero wrapper-side relayout of input or output.
    out_fb = jax.block_until_ready(
        dnn_forward(jnp.asarray(x.T), weights, biases,
                    x_layout="fb", out_layout="fb",
                    use_bf16_matmul=False, bf16_activations=False))
    assert out_fb.shape == (layers[-1], n)
    assert jnp.allclose(out_fb.T, ref, atol=1e-5, rtol=1e-5), "fb mismatch"

    # Default path: bf16 MXU operands (f32 accumulate), bf16 bias/tanh where
    # the chip supports it.  Loose tolerance expected vs. the f32 reference.
    out = jax.block_until_ready(dnn_forward(x, weights, biases))
    assert out.shape == (n, layers[-1])
    assert float(jnp.max(jnp.abs(out - ref))) < 1e-1, "bf16 mismatch"

    print("KERNEL_OK")
</pallas_src>

<mosaic_0001>
module attributes {stable_mosaic.version = 11 : i64} {
  func.func @_mlp_kernel(%arg0: i32, %arg1: memref<2x384xf32, #tpu.memory_space<vmem>>, %arg2: memref<32x2xf32, #tpu.memory_space<vmem>>, %arg3: memref<32x1xf32, #tpu.memory_space<vmem>>, %arg4: memref<32x32xf32, #tpu.memory_space<vmem>>, %arg5: memref<32x1xf32, #tpu.memory_space<vmem>>, %arg6: memref<32x32xf32, #tpu.memory_space<vmem>>, %arg7: memref<32x1xf32, #tpu.memory_space<vmem>>, %arg8: memref<32x1xf32, #tpu.memory_space<vmem>>, %arg9: memref<1x1xf32, #tpu.memory_space<vmem>>, %arg10: memref<1x384xf32, #tpu.memory_space<vmem>>) attributes {dimension_semantics = [#tpu.dimension_semantics<parallel>], iteration_bounds = array<i64: 1>, scalar_prefetch = 0 : i64, scratch_operands = 0 : i64, tpu.core_type = #tpu.core_type<tc>, window_params = [{transform_indices = @transform_0, window_bounds = array<i64: 2, 384>}, {pipeline_mode = #tpu.pipeline_mode<synchronous>, transform_indices = @transform_1, window_bounds = array<i64: 32, 2>}, {pipeline_mode = #tpu.pipeline_mode<synchronous>, transform_indices = @transform_2, window_bounds = array<i64: 32, 1>}, {pipeline_mode = #tpu.pipeline_mode<synchronous>, transform_indices = @transform_3, window_bounds = array<i64: 32, 32>}, {pipeline_mode = #tpu.pipeline_mode<synchronous>, transform_indices = @transform_4, window_bounds = array<i64: 32, 1>}, {pipeline_mode = #tpu.pipeline_mode<synchronous>, transform_indices = @transform_5, window_bounds = array<i64: 32, 32>}, {pipeline_mode = #tpu.pipeline_mode<synchronous>, transform_indices = @transform_6, window_bounds = array<i64: 32, 1>}, {pipeline_mode = #tpu.pipeline_mode<synchronous>, transform_indices = @transform_7, window_bounds = array<i64: 32, 1>}, {pipeline_mode = #tpu.pipeline_mode<synchronous>, transform_indices = @transform_8, window_bounds = array<i64: 1, 1>}, {transform_indices = @transform_9, window_bounds = array<i64: 1, 384>}]} {
    %c0 = arith.constant 0 : index
    %c0_0 = arith.constant 0 : index
    %0 = vector.load %arg1[%c0, %c0_0] : memref<2x384xf32, #tpu.memory_space<vmem>>, vector<2x384xf32>
    %c0_1 = arith.constant 0 : index
    %c0_2 = arith.constant 0 : index
    %1 = vector.load %arg3[%c0_1, %c0_2] : memref<32x1xf32, #tpu.memory_space<vmem>>, vector<32x1xf32>
    %c0_3 = arith.constant 0 : index
    %c0_4 = arith.constant 0 : index
    %2 = vector.load %arg2[%c0_3, %c0_4] : memref<32x2xf32, #tpu.memory_space<vmem>>, vector<32x2xf32>
    %3 = vector.extract_strided_slice %2 {offsets = [0, 0], sizes = [32, 1], strides = [1, 1]} : vector<32x2xf32> to vector<32x1xf32>
    %4 = vector.extract_strided_slice %0 {offsets = [0, 0], sizes = [1, 384], strides = [1, 1]} : vector<2x384xf32> to vector<1x384xf32>
    %5 = vector.broadcast %3 : vector<32x1xf32> to vector<32x384xf32>
    %6 = vector.broadcast %4 : vector<1x384xf32> to vector<32x384xf32>
    %7 = arith.mulf %5, %6 : vector<32x384xf32>
    %8 = vector.extract_strided_slice %2 {offsets = [0, 1], sizes = [32, 1], strides = [1, 1]} : vector<32x2xf32> to vector<32x1xf32>
    %9 = vector.extract_strided_slice %0 {offsets = [1, 0], sizes = [1, 384], strides = [1, 1]} : vector<2x384xf32> to vector<1x384xf32>
    %10 = vector.broadcast %8 : vector<32x1xf32> to vector<32x384xf32>
    %11 = vector.broadcast %9 : vector<1x384xf32> to vector<32x384xf32>
    %12 = arith.mulf %10, %11 : vector<32x384xf32>
    %13 = arith.addf %7, %12 : vector<32x384xf32>
    %14 = vector.broadcast %1 : vector<32x1xf32> to vector<32x384xf32>
    %15 = arith.addf %13, %14 : vector<32x384xf32>
    %16 = math.tanh %15 : vector<32x384xf32>
    %c0_5 = arith.constant 0 : index
    %c0_6 = arith.constant 0 : index
    %17 = vector.load %arg5[%c0_5, %c0_6] : memref<32x1xf32, #tpu.memory_space<vmem>>, vector<32x1xf32>
    %c0_7 = arith.constant 0 : index
    %c0_8 = arith.constant 0 : index
    %18 = vector.load %arg4[%c0_7, %c0_8] : memref<32x32xf32, #tpu.memory_space<vmem>>, vector<32x32xf32>
    %cst = arith.constant dense<0.000000e+00> : vector<32x384xf32>
    %19 = tpu.matmul %18, %16, %cst {dimension_numbers = #tpu.dot_dimension_numbers<[1], [0], [0], [1], [0, 0, 1, 1], [], []>} : vector<32x32xf32>, vector<32x384xf32>, vector<32x384xf32> -> vector<32x384xf32>
    %20 = vector.broadcast %17 : vector<32x1xf32> to vector<32x384xf32>
    %21 = arith.addf %19, %20 : vector<32x384xf32>
    %22 = math.tanh %21 : vector<32x384xf32>
    %c0_9 = arith.constant 0 : index
    %c0_10 = arith.constant 0 : index
    %23 = vector.load %arg7[%c0_9, %c0_10] : memref<32x1xf32, #tpu.memory_space<vmem>>, vector<32x1xf32>
    %c0_11 = arith.constant 0 : index
    %c0_12 = arith.constant 0 : index
    %24 = vector.load %arg6[%c0_11, %c0_12] : memref<32x32xf32, #tpu.memory_space<vmem>>, vector<32x32xf32>
    %cst_13 = arith.constant dense<0.000000e+00> : vector<32x384xf32>
    %25 = tpu.matmul %24, %22, %cst_13 {dimension_numbers = #tpu.dot_dimension_numbers<[1], [0], [0], [1], [0, 0, 1, 1], [], []>} : vector<32x32xf32>, vector<32x384xf32>, vector<32x384xf32> -> vector<32x384xf32>
    %26 = vector.broadcast %23 : vector<32x1xf32> to vector<32x384xf32>
    %27 = arith.addf %25, %26 : vector<32x384xf32>
    %28 = math.tanh %27 : vector<32x384xf32>
    %c0_14 = arith.constant 0 : index
    %c0_15 = arith.constant 0 : index
    %29 = vector.load %arg9[%c0_14, %c0_15] : memref<1x1xf32, #tpu.memory_space<vmem>>, vector<1x1xf32>
    %c0_16 = arith.constant 0 : index
    %c0_17 = arith.constant 0 : index
    %30 = vector.load %arg8[%c0_16, %c0_17] : memref<32x1xf32, #tpu.memory_space<vmem>>, vector<32x1xf32>
    %31 = vector.broadcast %30 : vector<32x1xf32> to vector<32x384xf32>
    %32 = arith.mulf %31, %28 : vector<32x384xf32>
    %cst_18 = arith.constant dense<0.000000e+00> : vector<384xf32>
    %33 = vector.multi_reduction <add>, %32, %cst_18 [0] : vector<32x384xf32> to vector<384xf32>
    %34 = vector.shape_cast %33 : vector<384xf32> to vector<1x384xf32>
    %35 = vector.broadcast %29 : vector<1x1xf32> to vector<1x384xf32>
    %36 = arith.addf %34, %35 : vector<1x384xf32>
    %c0_19 = arith.constant 0 : index
    %c0_20 = arith.constant 0 : index
    %37 = vector.load %arg10[%c0_19, %c0_20] : memref<1x384xf32, #tpu.memory_space<vmem>>, vector<1x384xf32>
    tpu.vector_store %arg10[%c0_19, %c0_20], %36 {strides = array<i32>} : memref<1x384xf32, #tpu.memory_space<vmem>>, vector<1x384xf32>,
    return
  }
  func.func @transform_0(%arg0: i32) -> (i32, i32) {
    %c0_i32 = arith.constant 0 : i32
    %c0_i32_0 = arith.constant 0 : i32
    return %c0_i32, %arg0 : i32, i32
  }
  func.func @transform_1(%arg0: i32) -> (i32, i32) {
    %c0_i32 = arith.constant 0 : i32
    %c0_i32_0 = arith.constant 0 : i32
    %c0_i32_1 = arith.constant 0 : i32
    return %c0_i32, %c0_i32_0 : i32, i32
  }
  func.func @transform_2(%arg0: i32) -> (i32, i32) {
    %c0_i32 = arith.constant 0 : i32
    %c0_i32_0 = arith.constant 0 : i32
    %c0_i32_1 = arith.constant 0 : i32
    return %c0_i32, %c0_i32_0 : i32, i32
  }
  func.func @transform_3(%arg0: i32) -> (i32, i32) {
    %c0_i32 = arith.constant 0 : i32
    %c0_i32_0 = arith.constant 0 : i32
    %c0_i32_1 = arith.constant 0 : i32
    return %c0_i32, %c0_i32_0 : i32, i32
  }
  func.func @transform_4(%arg0: i32) -> (i32, i32) {
    %c0_i32 = arith.constant 0 : i32
    %c0_i32_0 = arith.constant 0 : i32
    %c0_i32_1 = arith.constant 0 : i32
    return %c0_i32, %c0_i32_0 : i32, i32
  }
  func.func @transform_5(%arg0: i32) -> (i32, i32) {
    %c0_i32 = arith.constant 0 : i32
    %c0_i32_0 = arith.constant 0 : i32
    %c0_i32_1 = arith.constant 0 : i32
    return %c0_i32, %c0_i32_0 : i32, i32
  }
  func.func @transform_6(%arg0: i32) -> (i32, i32) {
    %c0_i32 = arith.constant 0 : i32
    %c0_i32_0 = arith.constant 0 : i32
    %c0_i32_1 = arith.constant 0 : i32
    return %c0_i32, %c0_i32_0 : i32, i32
  }
  func.func @transform_7(%arg0: i32) -> (i32, i32) {
    %c0_i32 = arith.constant 0 : i32
    %c0_i32_0 = arith.constant 0 : i32
    %c0_i32_1 = arith.constant 0 : i32
    return %c0_i32, %c0_i32_0 : i32, i32
  }
  func.func @transform_8(%arg0: i32) -> (i32, i32) {
    %c0_i32 = arith.constant 0 : i32
    %c0_i32_0 = arith.constant 0 : i32
    %c0_i32_1 = arith.constant 0 : i32
    return %c0_i32, %c0_i32_0 : i32, i32
  }
  func.func @transform_9(%arg0: i32) -> (i32, i32) {
    %c0_i32 = arith.constant 0 : i32
    %c0_i32_0 = arith.constant 0 : i32
    return %c0_i32, %arg0 : i32, i32
  }
}

</mosaic_0001>

<bundles_post_ra>
// kernel: tpu_custom_call.1
= control target key start
LH: loop header
LB: loop body
LE: loop exit
PB: predicated region body
PF: predicated region fallthrough
CT: control target
= control target key end

     0   :  { %s1196_s0 = inlined_call_operand.vmem [shape: f32[2,300], index: 0, kind: input, shape index: {}]   ;;  %s1197_s1 = inlined_call_operand.vmem [shape: f32[32,2], index: 1, kind: input, shape index: {}]   ;;  %s1198_s2 = inlined_call_operand.vmem [shape: f32[32,1], index: 2, kind: input, shape index: {}]   ;;  %s1199_s3 = inlined_call_operand.vmem [shape: f32[32,32], index: 3, kind: input, shape index: {}]   ;;  %s1200_s4 = inlined_call_operand.vmem [shape: f32[32,1], index: 4, kind: input, shape index: {}]   ;;  %s1201_s5 = inlined_call_operand.vmem [shape: f32[32,32], index: 5, kind: input, shape index: {}]   ;;  %s1202_s6 = inlined_call_operand.vmem [shape: f32[32,1], index: 6, kind: input, shape index: {}]   ;;  %s1203_s7 = inlined_call_operand.vmem [shape: f32[32,1], index: 7, kind: input, shape index: {}]   ;;  %s1204_s8 = inlined_call_operand.<no memory space> [shape: f32[1,1], index: 8, kind: input, shape index: {}]   ;;  %s1205_s9 = inlined_call_operand.hbm [shape: f32[1,300], index: 9, kind: output, shape index: {}]  }
   0x1   :  { %v14_v0 = vstv %s1204_s8 }
   0x2   :  { %15 = vst [vmem:[#allocation2] sm:$0x1] %v14_v0 }
   0x3   :  { %v42_v1 = vld [vmem:[%s1197_s1 + $0x10] sm:$0xff]  ;;  %v40_v2 = vld [vmem:[%s1197_s1] sm:$0xff]  ;;  %v989_v3 = vmov 1   ;;  %v41_v4 = vld [vmem:[%s1197_s1 + $0x8] sm:$0xff]  ;;  %v990_v5 = vmov 0  }
   0x4   :  { %889 = vset.pattern.permute.xlu0 %v989_v3  ;;  %887 = vset.pattern.permute.xlu1 %v989_v3 }
   0x5   :  { %113 = vperm.xlu0 %889, %v42_v1   ;;  %105 = vperm.xlu1 %887, %v40_v2  }
   0x9   :  { %890 = vset.pattern.permute.xlu0 %v990_v5  ;;  %109 = vperm.xlu1 %887, %v41_v4  }
   0xa   :  { %46 = vperm.xlu0 %890, %v40_v2  }
   0xb   :  { %16 = vsyncpa [#allocation4], 0  ;;  %v43_v6 = vld [vmem:[%s1197_s1 + $0x18] sm:$0xff]  ;;  %v37_v7 = vld [vmem:[%s1198_s2 + $0x8] sm:$0xff]  ;;  %vm243_vm0 = vcmask 261120   ;;  %v991_v24 = vmov 0.0   ;;  %v65_v26 = vlaneseq }
   0xc   :  { %v36_v8 = vld [vmem:[%s1198_s2] sm:$0xff]  ;;  %v38_v10 = vld [vmem:[%s1198_s2 + $0x10] sm:$0xff]  ;;  %v39_v12 = vld [vmem:[%s1198_s2 + $0x18] sm:$0xff]  ;;  %320 = vmatprep.mubr.f32.mxu0 %v991_v24 }
   0xd   :  { %888 = vset.pattern.permute.xlu1 %v990_v5  ;;  %v215_v9 = vld [vmem:[%s1200_s4] sm:$0xff]  ;;  %v217_v11 = vld [vmem:[%s1200_s4 + $0x10] sm:$0xff]  ;;  %v216_v14 = vld [vmem:[%s1200_s4 + $0x8] sm:$0xff]  ;;  %v1116_v27 = vshrl.u32 %v65_v26, 7  ;;  %vm773_vm1 = vcmp.lt.s32.totalorder %v65_v26, 384 }
   0xe   :  { %51 = vperm.xlu0 %890, %v41_v4   ;;  %61 = vperm.xlu1 %888, %v43_v6   ;;  %v442_v13 = vld [vmem:[%s1202_s6] sm:$0xff]  ;;  %v444_v15 = vld [vmem:[%s1202_s6 + $0x10] sm:$0xff]  ;;  %v218_v16 = vld [vmem:[%s1200_s4 + $0x18] sm:$0xff] }
   0xf   :  { %v669_v17 = vld [vmem:[%s1203_s7] sm:$0xff]  ;;  %v443_v18 = vld [vmem:[%s1202_s6 + $0x8] sm:$0xff]  ;;  %v671_v19 = vld [vmem:[%s1203_s7 + $0x10] sm:$0xff]  ;;  %v1119_v30 = vsub.s32 0, %v1116_v27  ;;  %v71_v31 = vsub.s32 2, %v1116_v27  ;;  %v75_v32 = vsub.s32 4, %v1116_v27 }
  0x10   :  { %v445_v20 = vld [vmem:[%s1202_s6 + $0x18] sm:$0xff]  ;;  %v668_v21 = vld [vmem:[#allocation2] sm:$0x1]  ;;  %v670_v22 = vld [vmem:[%s1203_s7 + $0x8] sm:$0xff]  ;;  %v122_v33 = vsub.s32 1, %v1116_v27  ;;  %v126_v34 = vsub.s32 3, %v1116_v27 }
  0x11   :  { %v1107_v23 = vld [vmem:[%s1199_s3] sm:$0xff]  ;;  %v672_v25 = vld [vmem:[%s1203_s7 + $0x18] sm:$0xff]  ;;  %v130_v35 = vsub.s32 5, %v1116_v27 }
  0x12   :  { %56 = vperm.xlu0 %890, %v42_v1   ;;  %891 = vset.pattern.permute.xlu1 %v989_v3  ;;  %v35_v36 = vld [vmem:[%s1196_s0] sm:$0x3f] }
  0x13   :  { %117 = vperm.xlu1 %891, %v43_v6   ;;  %830 = vmatprep.mubr.msk.f32.mxu1 %vm243_vm0, %v1107_v23  ;;  %v68_v39 = vrot.slane %v35_v36, %v1119_v30  ;;  %v72_v40 = vrot.slane %v35_v36, %v71_v31  ;;  %v76_v41 = vrot.slane %v35_v36, %v75_v32 }
  0x14   :  { %v123_v42 = vrot.slane %v35_v36, %v122_v33  ;;  %v127_v43 = vrot.slane %v35_v36, %v126_v34  ;;  %v131_v44 = vrot.slane %v35_v36, %v130_v35 }
  0x15   :  { %v83_v45 = vrot.slane %v68_v39, %v1119_v30  ;;  %v87_v46 = vrot.slane %v72_v40, %v1119_v30  ;;  %v91_v49 = vrot.slane %v76_v41, %v1119_v30 }
  0x16   :  { %178 = vperm.xlu0 %890, %v37_v7   ;;  %v138_v50 = vrot.slane %v123_v42, %v122_v33  ;;  %v142_v51 = vrot.slane %v127_v43, %v122_v33  ;;  %v146_v52 = vrot.slane %v131_v44, %v122_v33 }
  0x17   :  { %892 = vset.pattern.permute.xlu1 %v990_v5 }
  0x18   :  { %173 = vperm.xlu1 %892, %v36_v8  }
  0x1a   :  { %225 = vperm.xlu0 %890, %v215_v9  }
  0x1c   :  { %183 = vperm.xlu1 %892, %v38_v10  }
  0x1e   :  { %235 = vperm.xlu0 %890, %v217_v11  }
  0x20   :  { %188 = vperm.xlu1 %892, %v39_v12  }
  0x22   :  { %452 = vperm.xlu0 %890, %v442_v13  }
  0x24   :  { %230 = vperm.xlu1 %892, %v216_v14  }
  0x26   :  { %462 = vperm.xlu0 %890, %v444_v15  }
  0x28   :  { %240 = vperm.xlu1 %892, %v218_v16  }
  0x2a   :  { %675 = vperm.xlu0 %890, %v669_v17  }
  0x2c   :  { %457 = vperm.xlu1 %892, %v443_v18  }
  0x2e   :  { %685 = vperm.xlu0 %890, %v671_v19  }
  0x30   :  { %467 = vperm.xlu1 %892, %v445_v20  }
  0x32   :  { %734 = vperm.xlu0 %890, %v668_v21  }
  0x34   :  { %680 = vperm.xlu1 %892, %v670_v22  }
  0x38   :  { %690 = vperm.xlu1 %892, %v672_v25  }
  0x84   :  { %v106_v28 = vpop.permute.xlu1 %105  ;;  %v114_v29 = vpop.permute.xlu0 %113 }
  0x85   :  { %v147_v63 = vmul.f32 %v138_v50, %v106_v28  ;;  %v148_v0 = vmul.f32 %v142_v51, %v106_v28  ;;  %v149_v5 = vmul.f32 %v146_v52, %v106_v28  ;;  %v153_v14 = vmul.f32 %v138_v50, %v114_v29 }
  0x86   :  { %v154_v15 = vmul.f32 %v142_v51, %v114_v29  ;;  %v155_v19 = vmul.f32 %v146_v52, %v114_v29 }
  0x88   :  { %v110_v37 = vpop.permute.xlu1 %109 }
  0x89   :  { %v47_v38 = vpop.permute.xlu0 %46  ;;  %v150_v59 = vmul.f32 %v138_v50, %v110_v37  ;;  %v151_v60 = vmul.f32 %v142_v51, %v110_v37  ;;  %v152_v61 = vmul.f32 %v146_v52, %v110_v37 }
  0x8a   :  { %v92_v56 = vmul.f32 %v83_v45, %v47_v38  ;;  %v93_v57 = vmul.f32 %v87_v46, %v47_v38  ;;  %v94_v1 = vmul.f32 %v91_v49, %v47_v38 }
  0x8c   :  { %v159_v8 = vadd.f32 %v147_v63, %v92_v56  ;;  %v160_v9 = vadd.f32 %v148_v0, %v93_v57  ;;  %v161_v18 = vadd.f32 %v149_v5, %v94_v1 }
  0x8d   :  { %v52_v47 = vpop.permute.xlu0 %51  ;;  %v62_v48 = vpop.permute.xlu1 %61 }
  0x8e   :  { %v95_v53 = vmul.f32 %v83_v45, %v52_v47  ;;  %v96_v54 = vmul.f32 %v87_v46, %v52_v47  ;;  %v97_v55 = vmul.f32 %v91_v49, %v52_v47  ;;  %v101_v34 = vmul.f32 %v83_v45, %v62_v48 }
  0x8f   :  { %v102_v35 = vmul.f32 %v87_v46, %v62_v48  ;;  %v103_v38 = vmul.f32 %v91_v49, %v62_v48 }
  0x90   :  { %v162_v2 = vadd.f32 %v150_v59, %v95_v53  ;;  %v163_v3 = vadd.f32 %v151_v60, %v96_v54  ;;  %v164_v4 = vadd.f32 %v152_v61, %v97_v55 }
  0x91   :  { %v57_v58 = vpop.permute.xlu0 %56 }
  0x92   :  { %v118_v62 = vpop.permute.xlu1 %117  ;;  %v98_v6 = vmul.f32 %v83_v45, %v57_v58  ;;  %v99_v10 = vmul.f32 %v87_v46, %v57_v58  ;;  %v100_v16 = vmul.f32 %v91_v49, %v57_v58 }
  0x93   :  { %v156_v22 = vmul.f32 %v138_v50, %v118_v62  ;;  %v157_v25 = vmul.f32 %v142_v51, %v118_v62  ;;  %v158_v31 = vmul.f32 %v146_v52, %v118_v62 }
  0x94   :  { %v165_v32 = vadd.f32 %v153_v14, %v98_v6  ;;  %v166_v33 = vadd.f32 %v154_v15, %v99_v10  ;;  %v167_v37 = vadd.f32 %v155_v19, %v100_v16 }
  0x95   :  { %v179_v7 = vpop.permute.xlu0 %178  ;;  %v168_v41 = vadd.f32 %v156_v22, %v101_v34  ;;  %v169_v42 = vadd.f32 %v157_v25, %v102_v35  ;;  %v170_v43 = vadd.f32 %v158_v31, %v103_v38 }
  0x96   :  { %v194_v11 = vadd.f32 %v179_v7, %v162_v2  ;;  %v195_v12 = vadd.f32 %v179_v7, %v163_v3  ;;  %v196_v13 = vadd.f32 %v179_v7, %v164_v4  ;;  %v220_v2 = vld [vmem:[%s1199_s3 + $0x8] sm:$0xff]  ;;  %v221_v3 = vld [vmem:[%s1199_s3 + $0x10] sm:$0xff]  ;;  %v222_v4 = vld [vmem:[%s1199_s3 + $0x18] sm:$0xff] }
  0x97   :  { %v174_v17 = vpop.permute.xlu1 %173 }
  0x98   :  { %893 = vtanh.f32 %v194_v11  ;;  %v191_v20 = vadd.f32 %v174_v17, %v159_v8  ;;  %v192_v21 = vadd.f32 %v174_v17, %v160_v9  ;;  %v193_v28 = vadd.f32 %v174_v17, %v161_v18 }
  0x99   :  { %895 = vtanh.f32 %v195_v12  ;;  %v226_v6 = vpop.permute.xlu0 %225 }
  0x9a   :  { %897 = vtanh.f32 %v196_v13 }
  0x9b   :  { %899 = vtanh.f32 %v191_v20  ;;  %v184_v36 = vpop.permute.xlu1 %183 }
  0x9c   :  { %901 = vtanh.f32 %v192_v21  ;;  %v197_v39 = vadd.f32 %v184_v36, %v165_v32  ;;  %v198_v29 = vadd.f32 %v184_v36, %v166_v33  ;;  %v199_v40 = vadd.f32 %v184_v36, %v167_v37 }
  0x9d   :  { %903 = vtanh.f32 %v193_v28  ;;  %v236_v20 = vpop.permute.xlu0 %235 }
  0x9e   :  { %905 = vtanh.f32 %v197_v39 }
  0x9f   :  { %v189_v44 = vpop.permute.xlu1 %188  ;;  %907 = vtanh.f32 %v198_v29 }
  0xa0   :  { %v200_v47 = vadd.f32 %v189_v44, %v168_v41  ;;  %v201_v50 = vadd.f32 %v189_v44, %v169_v42  ;;  %v202_v51 = vadd.f32 %v189_v44, %v170_v43  ;;  %909 = vtanh.f32 %v199_v40 }
  0xa2   :  { %v894_v45 = vpop.eup %893  ;;  %911 = vtanh.f32 %v200_v47 }
  0xa3   :  { %v896_v46 = vpop.eup %895  ;;  %913 = vtanh.f32 %v201_v50  ;;  %v231_v5 = vpop.permute.xlu1 %230 }
  0xa4   :  { %v898_v48 = vpop.eup %897  ;;  %915 = vtanh.f32 %v202_v51 }
  0xa5   :  { %v900_v49 = vpop.eup %899 }
  0xa6   :  { %v902_v52 = vpop.eup %901  ;;  %v852_v53 = vpack.c.bf16 %v894_v45, %v900_v49 }
  0xa7   :  { %v904_v54 = vpop.eup %903  ;;  %v850_v55 = vpack.c.bf16 %v896_v46, %v902_v52  ;;  %v241_v15 = vpop.permute.xlu1 %240  ;;  %v447_v52 = vld [vmem:[%s1201_s5 + $0x8] sm:$0xff] }
  0xa8   :  { %v858_v56 = vpack.c.bf16 %v898_v48, %v904_v54  ;;  %v906_v57 = vpop.eup %905  ;;  %v448_v54 = vld [vmem:[%s1201_s5 + $0x10] sm:$0xff] }
  0xa9   :  { %851 = vmatprep.subr.bf16.mxu0 %v850_v55  ;;  %v908_v58 = vpop.eup %907 }
  0xaa   :  { %859 = vmatprep.subr.bf16.mxu1 %v858_v56  ;;  %853 = vmatpush1.bf16.msra.mxu0 %v852_v53  ;;  %v910_v59 = vpop.eup %909 }
  0xab   :  { %861 = vmatpush3.bf16.msra.mxu1 %v858_v56 }
  0xac   :  { %v912_v60 = vpop.eup %911 }
  0xad   :  { %v914_v61 = vpop.eup %913  ;;  %v856_v62 = vpack.c.bf16 %v912_v60, %v906_v57  ;;  %v453_v60 = vpop.permute.xlu0 %452 }
  0xae   :  { %v916_v63 = vpop.eup %915  ;;  %v854_v0 = vpack.c.bf16 %v914_v61, %v908_v58  ;;  %v449_v58 = vld [vmem:[%s1201_s5 + $0x18] sm:$0xff] }
  0xaf   :  { %v862_v1 = vpack.c.bf16 %v916_v63, %v910_v59  ;;  %v458_v59 = vpop.permute.xlu1 %457 }
  0xb0   :  { %855 = vmatprep.subr.bf16.mxu0 %v854_v0 }
  0xb1   :  { %863 = vmatprep.subr.bf16.mxu1 %v862_v1  ;;  %857 = vmatpush1.bf16.msra.mxu0 %v856_v62 }
  0xb2   :  { %865 = vmatpush3.bf16.msra.mxu1 %v862_v1 }
  0xb3   :  { %v468_v1 = vpop.permute.xlu1 %467 }
  0xb4   :  { %790 = vmatmul.mubr.msk.f32.vlgmr.msra.gmra.mrb[0].mxu0 %vm243_vm0, %v1107_v23  ;;  %v1157_v23 = vld [vmem:[%s1201_s5] sm:$0xff]  ;;  %s993_s5 = smov [#allocation3]  }
  0xb5   :  { %831 = vmatmul.mubr.msk.f32.vlgmr.msra.gmra.mrb[0].mxu1 %vm243_vm0, %v220_v2  ;;  %326 = vmatprep.mubr.f32.mxu0 %v991_v24  ;;  %s782_s16 = sshll.u32 %s993_s5, 4  ;;  %s783_s16 = int_to_ptr.vmem [resolvable:$true] %s782_s16 }
  0xb6   :  { %833 = vmatprep.mubr.msk.f32.mxu1 %vm243_vm0, %v221_v3  ;;  %s965_s8 = scalar_lea.vmem %s783_s16, 48  ;;  %s969_s17 = scalar_lea.vmem %s783_s16, 64 }
  0xb7   :  { %p966_p0 = scmp.ne.s32.totalorder %s783_s16, %s965_s8  ;;  %p970_p1 = scmp.lt.s32.totalorder %s783_s16, %s783_s16 }
  0xb8   :  { %791 = vmatmul.mubr.msk.f32.gmra.mrb[2].mxu0 %vm243_vm0, %v220_v2  ;;  %p971_p2 = scmp.lt.s32.totalorder %s969_s17, %s965_s8 }
  0xb9   :  { %834 = vmatmul.mubr.msk.f32.gmra.mrb[2].mxu1 %vm243_vm0, %v222_v4  ;;  %332 = vmatprep.mubr.f32.mxu0 %v991_v24 }
  0xba   :  { %546 = vmatprep.mubr.f32.mxu1 %v991_v24  ;;  %p972_p3 = por %p971_p2, %p970_p1 }
  0xbc   :  { %792 = vmatmul.mubr.msk.f32.gmra.mrb[4].mxu0 %vm243_vm0, %v221_v3  ;;  %v463_v3 = vpop.permute.xlu0 %462  ;;  %p973_p4 = pnand %p972_p3, %p966_p0 }
  0xbd   :  { %338 = vmatprep.mubr.f32.mxu0 %v991_v24 }
  0xc0   :  { %793 = vmatmul.mubr.msk.f32.gmra.mrb[6].mxu0 %vm243_vm0, %v222_v4 }
  0xc1   :  { %844 = vmatprep.mubr.msk.f32.mxu0 %vm243_vm0, %v1157_v23 }
 0x187   :  { %v322_v7 = vpop.f32.mrb[0].mxu0 }
 0x188   :  { %v323_v8 = vadd.f32 %v322_v7, %v226_v6  ;;  %v832_v9 = vpop.f32.mrb[0].mxu1  ;;  %v324_v10 = vpop.f32.mrb[1].mxu0 }
 0x189   :  { %v417_v11 = vadd.f32 %v832_v9, %v231_v5  ;;  %v325_v12 = vadd.f32 %v324_v10, %v226_v6  ;;  %v411_v13 = vpop.f32.mrb[1].mxu1 }
 0x18a   :  { %917 = vtanh.f32 %v323_v8  ;;  %v412_v14 = vadd.f32 %v411_v13, %v226_v6 }
 0x18b   :  { %919 = vtanh.f32 %v417_v11  ;;  %v328_v16 = vpop.f32.mrb[2].mxu0 }
 0x18c   :  { %921 = vtanh.f32 %v325_v12  ;;  %v329_v17 = vadd.f32 %v328_v16, %v231_v5  ;;  %v835_v18 = vpop.f32.mrb[2].mxu1  ;;  %v330_v19 = vpop.f32.mrb[3].mxu0 }
 0x18d   :  { %923 = vtanh.f32 %v412_v14  ;;  %v427_v21 = vadd.f32 %v835_v18, %v241_v15  ;;  %v331_v22 = vadd.f32 %v330_v19, %v231_v5  ;;  %v421_v25 = vpop.f32.mrb[3].mxu1  ;;  %v676_v12 = vpop.permute.xlu0 %675 }
 0x18e   :  { %925 = vtanh.f32 %v329_v17  ;;  %v422_v28 = vadd.f32 %v421_v25, %v236_v20 }
 0x18f   :  { %927 = vtanh.f32 %v427_v21  ;;  %v334_v31 = vpop.f32.mrb[4].mxu0 }
 0x190   :  { %929 = vtanh.f32 %v331_v22  ;;  %v335_v32 = vadd.f32 %v334_v31, %v236_v20  ;;  %v336_v33 = vpop.f32.mrb[5].mxu0 }
 0x191   :  { %931 = vtanh.f32 %v422_v28  ;;  %v337_v34 = vadd.f32 %v336_v33, %v236_v20 }
 0x192   :  { %933 = vtanh.f32 %v335_v32  ;;  %v686_v32 = vpop.permute.xlu0 %685 }
 0x193   :  { %v340_v35 = vpop.f32.mrb[6].mxu0  ;;  %935 = vtanh.f32 %v337_v34 }
 0x194   :  { %v918_v36 = vpop.eup %917  ;;  %v341_v37 = vadd.f32 %v340_v35, %v241_v15  ;;  %v342_v38 = vpop.f32.mrb[7].mxu0 }
 0x195   :  { %v920_v39 = vpop.eup %919  ;;  %v343_v29 = vadd.f32 %v342_v38, %v241_v15  ;;  %v681_v15 = vpop.permute.xlu1 %680 }
 0x196   :  { %v922_v40 = vpop.eup %921  ;;  %937 = vtanh.f32 %v341_v37 }
 0x197   :  { %v924_v41 = vpop.eup %923  ;;  %939 = vtanh.f32 %v343_v29 }
 0x198   :  { %v926_v42 = vpop.eup %925  ;;  %v874_v43 = vpack.c.bf16 %v920_v39, %v924_v41 }
 0x199   :  { %v928_v44 = vpop.eup %927  ;;  %v868_v47 = vpack.c.bf16 %v926_v42, %v918_v36  ;;  %v691_v37 = vpop.permute.xlu1 %690 }
 0x19a   :  { %v930_v50 = vpop.eup %929  ;;  %875 = vmatprep.subr.bf16.mxu0 %v874_v43 }
 0x19b   :  { %v932_v51 = vpop.eup %931  ;;  %877 = vmatpush3.bf16.msra.mxu0 %v874_v43  ;;  %v866_v45 = vpack.c.bf16 %v930_v50, %v922_v40 }
 0x19c   :  { %v878_v46 = vpack.c.bf16 %v928_v44, %v932_v51  ;;  %v934_v48 = vpop.eup %933 }
 0x19d   :  { %867 = vmatprep.subr.bf16.mxu1 %v866_v45  ;;  %v936_v49 = vpop.eup %935 }
 0x19e   :  { %879 = vmatprep.subr.bf16.mxu0 %v878_v46  ;;  %869 = vmatpush1.bf16.msra.mxu1 %v868_v47 }
 0x19f   :  { %881 = vmatpush3.bf16.msra.mxu0 %v878_v46 }
 0x1a0   :  { %v938_v53 = vpop.eup %937 }
 0x1a1   :  { %v940_v55 = vpop.eup %939  ;;  %v872_v56 = vpack.c.bf16 %v938_v53, %v934_v48 }
 0x1a2   :  { %845 = vmatmul.mubr.msk.f32.vlgmr.msra.gmra.mrb[8].mxu0 %vm243_vm0, %v447_v52  ;;  %v870_v57 = vpack.c.bf16 %v940_v55, %v936_v49 }
 0x1a3   :  { %847 = vmatprep.mubr.msk.f32.mxu0 %vm243_vm0, %v448_v54 }
 0x1a4   :  { %871 = vmatprep.subr.bf16.mxu1 %v870_v57 }
 0x1a5   :  { %873 = vmatpush1.bf16.msra.mxu1 %v872_v56 }
 0x1a6   :  { %848 = vmatmul.mubr.msk.f32.gmra.mrb[10].mxu0 %vm243_vm0, %v449_v58 }
 0x1a8   :  { %798 = vmatmul.mubr.msk.f32.vlgmr.msra.gmra.mrb[4].mxu1 %vm243_vm0, %v1157_v23 }
 0x1a9   :  { %552 = vmatprep.mubr.f32.mxu1 %v991_v24 }
 0x1ac   :  { %799 = vmatmul.mubr.msk.f32.gmra.mrb[6].mxu1 %vm243_vm0, %v447_v52 }
 0x1ad   :  { %558 = vmatprep.mubr.f32.mxu1 %v991_v24 }
 0x1b0   :  { %800 = vmatmul.mubr.msk.f32.gmra.mrb[8].mxu1 %vm243_vm0, %v448_v54 }
 0x1b1   :  { %564 = vmatprep.mubr.f32.mxu1 %v991_v24 }
 0x1b4   :  { %801 = vmatmul.mubr.msk.f32.gmra.mrb[10].mxu1 %vm243_vm0, %v449_v58 }
 0x275   :  { %v846_v61 = vpop.f32.mrb[8].mxu0 }
 0x276   :  { %v643_v62 = vadd.f32 %v846_v61, %v458_v59  ;;  %v637_v63 = vpop.f32.mrb[9].mxu0 }
 0x277   :  { %v638_v0 = vadd.f32 %v637_v63, %v453_v60 }
 0x278   :  { %941 = vtanh.f32 %v643_v62 }
 0x279   :  { %943 = vtanh.f32 %v638_v0  ;;  %v849_v2 = vpop.f32.mrb[10].mxu0 }
 0x27a   :  { %v653_v4 = vadd.f32 %v849_v2, %v468_v1  ;;  %v647_v23 = vpop.f32.mrb[11].mxu0 }
 0x27b   :  { %v648_v5 = vadd.f32 %v647_v23, %v463_v3  ;;  %v548_v6 = vpop.f32.mrb[4].mxu1 }
 0x27c   :  { %945 = vtanh.f32 %v653_v4  ;;  %v549_v7 = vadd.f32 %v548_v6, %v453_v60  ;;  %v550_v24 = vpop.f32.mrb[5].mxu1 }
 0x27d   :  { %947 = vtanh.f32 %v648_v5  ;;  %v551_v8 = vadd.f32 %v550_v24, %v453_v60 }
 0x27e   :  { %949 = vtanh.f32 %v549_v7 }
 0x27f   :  { %v554_v9 = vpop.f32.mrb[6].mxu1  ;;  %951 = vtanh.f32 %v551_v8  ;;  %v992_v8 = vmov 1966171168  }
 0x280   :  { %v555_v10 = vadd.f32 %v554_v9, %v458_v59  ;;  %v556_v11 = vpop.f32.mrb[7].mxu1  ;;  %v749_v9 = vunpack.c.l.s4 %v992_v8 }
 0x281   :  { %v557_v13 = vadd.f32 %v556_v11, %v458_v59  ;;  %v735_v11 = vpop.permute.xlu0 %734 }
 0x282   :  { %v942_v14 = vpop.eup %941  ;;  %953 = vtanh.f32 %v555_v10 }
 0x283   :  { %v944_v16 = vpop.eup %943  ;;  %v698_v17 = vmul.f32 %v942_v14, %v681_v15  ;;  %955 = vtanh.f32 %v557_v13  ;;  %v560_v18 = vpop.f32.mrb[8].mxu1 }
 0x284   :  { %v695_v19 = vmul.f32 %v944_v16, %v676_v12  ;;  %v561_v20 = vadd.f32 %v560_v18, %v463_v3  ;;  %v562_v21 = vpop.f32.mrb[9].mxu1  ;;  %v750_v16 = vunpack.c.0.s8 %v749_v9 }
 0x285   :  { %v563_v22 = vadd.f32 %v562_v21, %v463_v3 }
 0x286   :  { %v946_v25 = vpop.eup %945  ;;  %v723_v28 = vadd.f32 %v698_v17, %v695_v19  ;;  %957 = vtanh.f32 %v561_v20  ;;  %v740_v17 = vrot.slane %v735_v11, %v1119_v30 }
 0x287   :  { %v948_v31 = vpop.eup %947  ;;  %959 = vtanh.f32 %v563_v22  ;;  %v566_v33 = vpop.f32.mrb[10].mxu1  ;;  %v704_v29 = vmul.f32 %v946_v25, %v691_v37  ;;  %v753_v25 = vsub.s32 %v750_v16, %v1116_v27 }
 0x288   :  { %v701_v34 = vmul.f32 %v948_v31, %v686_v32  ;;  %v567_v35 = vadd.f32 %v566_v33, %v468_v1  ;;  %v568_v36 = vpop.f32.mrb[11].mxu1  ;;  %v950_v39 = vpop.eup %949 }
 0x289   :  { %v569_v38 = vadd.f32 %v568_v36, %v468_v1  ;;  %v952_v41 = vpop.eup %951  ;;  %v693_v47 = vmul.f32 %v950_v39, %v676_v12 }
 0x28a   :  { %v724_v40 = vadd.f32 %v723_v28, %v701_v34  ;;  %961 = vtanh.f32 %v567_v35  ;;  %v694_v51 = vmul.f32 %v952_v41, %v676_v12 }
 0x28b   :  { %963 = vtanh.f32 %v569_v38 }
 0x28c   :  { %v954_v42 = vpop.eup %953  ;;  %v725_v43 = vadd.f32 %v724_v40, %v704_v29 }
 0x28d   :  { %v956_v44 = vpop.eup %955  ;;  %v696_v50 = vmul.f32 %v954_v42, %v681_v15 }
 0x28e   :  { %v697_v45 = vmul.f32 %v956_v44, %v681_v15  ;;  %v726_v46 = vrot.slane %v725_v43, 4 }
 0x28f   :  { %v705_v48 = vadd.f32 %v696_v50, %v693_v47 }
 0x290   :  { %v958_v49 = vpop.eup %957  ;;  %v714_v52 = vadd.f32 %v697_v45, %v694_v51  ;;  %v727_v56 = vadd.f32 %v726_v46, %v725_v43 }
 0x291   :  { %v960_v53 = vpop.eup %959  ;;  %v699_v54 = vmul.f32 %v958_v49, %v686_v32 }
 0x292   :  { %v700_v55 = vmul.f32 %v960_v53, %v686_v32  ;;  %v728_v63 = vrot.slane %v727_v56, 2 }
 0x293   :  { %v706_v57 = vadd.f32 %v705_v48, %v699_v54 }
 0x294   :  { %v962_v58 = vpop.eup %961  ;;  %v715_v59 = vadd.f32 %v714_v52, %v700_v55  ;;  %v729_v4 = vadd.f32 %v728_v63, %v727_v56 }
 0x295   :  { %v964_v60 = vpop.eup %963  ;;  %v702_v61 = vmul.f32 %v962_v58, %v691_v37 }
 0x296   :  { %v703_v62 = vmul.f32 %v964_v60, %v691_v37  ;;  %v730_v24 = vrot.slane %v729_v4, 1 }
 0x297   :  { %v707_v0 = vadd.f32 %v706_v57, %v702_v61 }
 0x298   :  { %v716_v1 = vadd.f32 %v715_v59, %v703_v62  ;;  %v731_v15 = vadd.f32 %v730_v24, %v729_v4 }
 0x299   :  { %v708_v2 = vrot.slane %v707_v0, 4 }
 0x29a   :  { %v717_v3 = vrot.slane %v716_v1, 4  ;;  %v743_v22 = vadd.f32 %v740_v17, %v731_v15 }
 0x29b   :  { %v709_v23 = vadd.f32 %v708_v2, %v707_v0 }
 0x29c   :  { %v718_v5 = vadd.f32 %v717_v3, %v716_v1  ;;  %v761_v32 = vrot.slane %v743_v22, %v753_v25 }
 0x29d   :  { %v710_v6 = vrot.slane %v709_v23, 2 }
 0x29e   :  { %v719_v7 = vrot.slane %v718_v5, 2 }
 0x29f   :  { %v711_v10 = vadd.f32 %v710_v6, %v709_v23 }
 0x2a0   :  { %v720_v12 = vadd.f32 %v719_v7, %v718_v5 }
 0x2a1   :  { %v712_v13 = vrot.slane %v711_v10, 1 }
 0x2a2   :  { %v721_v14 = vrot.slane %v720_v12, 1 }
 0x2a3   :  { %v713_v18 = vadd.f32 %v712_v13, %v711_v10 }
 0x2a4   :  { %v722_v19 = vadd.f32 %v721_v14, %v720_v12 }
 0x2a5   :  { %v741_v20 = vadd.f32 %v740_v17, %v713_v18 }
 0x2a6   :  { %v742_v21 = vadd.f32 %v740_v17, %v722_v19 }
 0x2a8   :  { %v747_v28 = vcombine.low %v741_v20, %v742_v21 }
 0x2aa   :  { %v754_v31 = vrot.slane %v747_v28, %v753_v25 }
 0x2ac   :  { %v762_v33 = vcombine.low %v754_v31, %v761_v32 }
 0x2ae   :  { %v769_v34 = vrot.slane %v762_v33, %v753_v25 }
 0x2b0   :  { %775 = vst.msk [vmem:[#allocation3] sm:$0x7] %vm773_vm1, %v769_v34 }
 0x2b1   :  { %976 = shalt.err (!%p973_p4)
}
 0x2b2   :  { %s977_s20 = scalar_lea.hbm %s1205_s9, 48 }
 0x2b3   :  { %p978_p5 = scmp.ne.s32.totalorder %s1205_s9, %s977_s20  ;;  %p981_p6 = scmp.lt.u32.totalorder %s977_s20, %s1205_s9 }
 0x2b5   :  { %p983_p7 = pnand %p981_p6, %p978_p5 }
 0x2b7   :  { %986 = shalt.err (!%p983_p7)
}
 0x2b8   :  { %785 = dma.vmem_to_hbm [thread:$0]  %s783_s16, 48, %s1205_s9, [#allocation4]  }
 0x2b9   :  { %987 = dma.done.wait [#allocation4], 48  }
 0x2ba   :  { %988 = vsyncadd [#allocation4], 4294967248 }
 0x2bb   :  { %789 = vsyncpa [#allocation4], 1 }

</bundles_post_ra>
